<compile_context>
chip_gen: v5e
topology: v5e:2x2
jax: 0.10.0
libtpu: 0.0.40
codegen_flags: <defaults>
</compile_context>

<pallas_src>
import jax
import jax.numpy as jnp
import numpy as np
from jax import lax
from jax.experimental import pallas as pl
from jax.experimental.pallas import tpu as pltpu

EPS = 1e-5


def _conv_row_matrices(w_hwio, W):
    """Fold the dx taps and the 'same' zero-padding along W of a 3x3 HWIO conv
    into 3 block-structured matrices (one per dy) of shape (W*Cin, W*Cout), so
    each dy tap becomes one lane-dense MXU matmul in the (N*H, W*C) layout."""
    kh, kw, Cin, Cout = w_hwio.shape
    mats = []
    for dy in range(kh):
        m = jnp.zeros((W * Cin, W * Cout), jnp.float32)
        for dx in range(kw):
            sel = np.zeros((W, W), np.float32)            # sel[w_in, w_out]
            for wo in range(W):
                wi = wo + dx - 1
                if 0 <= wi < W:                           # OOB => zero padding
                    sel[wi, wo] = 1.0
            # kron: row index wi*Cin+ci, col index wo*Cout+co
            m = m + jnp.kron(jnp.asarray(sel), w_hwio[dy, dx])
        mats.append(m)
    return jnp.stack(mats, axis=0)                        # (3, W*Cin, W*Cout)


def _make_kernel(N, H, W, Cin, Cout, has_proj):
    NH = N * H

    def body(x_ref, w1_ref, g1_ref, be1_ref, w2_ref, g2_ref, be2_ref,
             pm_ref, pt_ref, o_ref, wi_ref, bi_ref):
        x = x_ref[...]                                     # (NH, W*Cin) f32
        x_bf = x.astype(jnp.bfloat16)                      # cast once, reused

        # dy = +/-1 boundary masks, hoisted once and reused by both convs.
        hh = lax.broadcasted_iota(jnp.int32, (NH, 1), 0) % H
        mask_up = hh >= 1                                  # source row h-1 exists
        mask_dn = hh <= H - 2                              # source row h+1 exists

        def conv3x3(z, z_bf, w_ref):
            # z: (NH, W*Cz) f32 (rolls/masks); z_bf: same data in bf16 (center tap).
            up = jnp.where(mask_up, pltpu.roll(z, shift=1, axis=0), 0.0)       # row h-1
            dn = jnp.where(mask_dn, pltpu.roll(z, shift=NH - 1, axis=0), 0.0)  # row h+1
            acc = jnp.dot(z_bf, w_ref[1], preferred_element_type=jnp.float32)
            acc = acc + jnp.dot(up.astype(jnp.bfloat16), w_ref[0],
                                preferred_element_type=jnp.float32)
            acc = acc + jnp.dot(dn.astype(jnp.bfloat16), w_ref[2],
                                preferred_element_type=jnp.float32)
            return acc                                     # (NH, W*Cout) f32

        def bn(z, g_ref, be_ref, relu):
            # training-mode BatchNorm2d folded into a per-channel scale/shift.
            s1 = jnp.sum(z, axis=0, keepdims=True)         # (1, W*Cout)
            s2 = jnp.sum(z * z, axis=0, keepdims=True)     # (1, W*Cout)
            # one small matmul: lane sums -> per-channel [mean; E[x^2]] (1/count folded into pm).
            mom = jnp.dot(jnp.concatenate([s1, s2], axis=0), pm_ref[...],
                          preferred_element_type=jnp.float32)                  # (2, Cout)
            mean = mom[0:1, :]
            var = mom[1:2, :] - mean * mean                # biased variance
            scale_c = g_ref[...] * lax.rsqrt(var + EPS)    # (1, Cout)
            shift_c = be_ref[...] - mean * scale_c
            # one small matmul: per-channel [scale; shift] -> per-lane (2, W*Cout).
            sc_sh = jnp.dot(jnp.concatenate([scale_c, shift_c], axis=0), pt_ref[...],
                            preferred_element_type=jnp.float32)
            y = z * sc_sh[0:1, :] + sc_sh[1:2, :]          # 1 mul + 1 add on the big slab
            return jnp.maximum(y, 0.0) if relu else y

        h1 = bn(conv3x3(x, x_bf, w1_ref), g1_ref, be1_ref, relu=True)
        h2 = bn(conv3x3(h1, h1.astype(jnp.bfloat16), w2_ref), g2_ref, be2_ref, relu=False)

        if has_proj:
            ident = jnp.dot(x_bf, wi_ref[...],
                            preferred_element_type=jnp.float32) + bi_ref[...]
        else:
            ident = x                                      # nn.Identity(): no matmul, no extra inputs

        o_ref[...] = jnp.maximum(h2 + ident, 0.0)

    if has_proj:
        def kernel(x_ref, w1_ref, g1_ref, be1_ref, w2_ref, g2_ref, be2_ref,
                   pm_ref, pt_ref, wi_ref, bi_ref, o_ref):
            body(x_ref, w1_ref, g1_ref, be1_ref, w2_ref, g2_ref, be2_ref,
                 pm_ref, pt_ref, o_ref, wi_ref, bi_ref)
    else:
        def kernel(x_ref, w1_ref, g1_ref, be1_ref, w2_ref, g2_ref, be2_ref,
                   pm_ref, pt_ref, o_ref):
            body(x_ref, w1_ref, g1_ref, be1_ref, w2_ref, g2_ref, be2_ref,
                 pm_ref, pt_ref, o_ref, None, None)

    return kernel


def residual_block_pallas(x_nchw, params):
    w1, b1, g1, be1, w2, b2, g2, be2, wi, bi = params
    N, Cin, H, W = x_nchw.shape
    Cout = w1.shape[-1]
    NH = N * H
    has_proj = (Cin != Cout)

    # layout glue: NCHW -> lane-dense (N*H, W*C)
    x2 = jnp.transpose(x_nchw, (0, 2, 3, 1)).reshape(NH, W * Cin)

    # conv weights as 3 block matrices per conv (bf16 MXU operands, f32 acc).
    w1m = _conv_row_matrices(w1, W).astype(jnp.bfloat16)   # (3, W*Cin,  W*Cout)
    w2m = _conv_row_matrices(w2, W).astype(jnp.bfloat16)   # (3, W*Cout, W*Cout)
    # b1/b2 dropped: per-channel bias before training-mode BN is cancelled by mean subtraction.

    # channel-sum / channel-broadcast projections for BN in the (.., W*Cout) layout.
    P = jnp.kron(jnp.ones((W, 1), jnp.float32), jnp.eye(Cout, dtype=jnp.float32))  # (W*Cout, Cout)
    PM = P / float(N * H * W)                              # 1/count folded in (lane sum -> channel mean)
    PT = jnp.transpose(P)                                  # (Cout, W*Cout)

    args = [x2, w1m, g1.reshape(1, Cout), be1.reshape(1, Cout),
            w2m, g2.reshape(1, Cout), be2.reshape(1, Cout), PM, PT]
    if has_proj:
        wim = jnp.kron(jnp.eye(W, dtype=jnp.float32), wi).astype(jnp.bfloat16)     # (W*Cin, W*Cout)
        bi_lane = jnp.tile(bi, W).reshape(1, W * Cout)
        args += [wim, bi_lane]

    kernel = _make_kernel(N, H, W, Cin, Cout, has_proj)
    vmem = lambda: pl.BlockSpec(memory_space=pltpu.MemorySpace.VMEM)

    out2 = pl.pallas_call(
        kernel,
        out_shape=jax.ShapeDtypeStruct((NH, W * Cout), jnp.float32),
        in_specs=[vmem() for _ in args],
        out_specs=vmem(),
        compiler_params=pltpu.CompilerParams(vmem_limit_bytes=32 * 1024 * 1024),
    )(*args)

    # layout glue: back to NCHW
    return out2.reshape(N, H, W, Cout).transpose(0, 3, 1, 2)


def residual_block_reference(x, params):
    """Pure-JAX reference (same semantics) used only to sanity-check the kernel."""
    w1, b1, g1, be1, w2, b2, g2, be2, wi, bi = params
    Cin = x.shape[1]
    Cout = w1.shape[-1]

    def conv(z, w, b):
        y = lax.conv_general_dilated(
            z, w, window_strides=(1, 1), padding="SAME",
            dimension_numbers=("NCHW", "HWIO", "NCHW"))
        return y + b.reshape(1, -1, 1, 1)

    def bn(z, g, be):
        mean = jnp.mean(z, axis=(0, 2, 3), keepdims=True)
        var = jnp.mean((z - mean) ** 2, axis=(0, 2, 3), keepdims=True)
        return ((z - mean) * lax.rsqrt(var + EPS) * g.reshape(1, -1, 1, 1)
                + be.reshape(1, -1, 1, 1))

    h = jnp.maximum(bn(conv(x, w1, b1), g1, be1), 0.0)
    h = bn(conv(h, w2, b2), g2, be2)
    ident = conv(x, wi.reshape(1, 1, Cin, Cout), bi)
    return jnp.maximum(h + ident, 0.0)


def make_params(key, Cin, Cout):
    ks = jax.random.split(key, 8)
    s1 = 1.0 / np.sqrt(Cin * 9)
    s2 = 1.0 / np.sqrt(Cout * 9)
    w1 = jax.random.normal(ks[0], (3, 3, Cin, Cout), jnp.float32) * s1     # HWIO
    b1 = jax.random.normal(ks[1], (Cout,), jnp.float32) * s1
    w2 = jax.random.normal(ks[2], (3, 3, Cout, Cout), jnp.float32) * s2
    b2 = jax.random.normal(ks[3], (Cout,), jnp.float32) * s2
    g1 = 1.0 + 0.1 * jax.random.normal(ks[4], (Cout,), jnp.float32)
    be1 = 0.1 * jax.random.normal(ks[5], (Cout,), jnp.float32)
    g2 = 1.0 + 0.1 * jax.random.normal(ks[6], (Cout,), jnp.float32)
    be2 = 0.1 * jax.random.normal(ks[7], (Cout,), jnp.float32)
    if Cin == Cout:
        wi = jnp.eye(Cin, dtype=jnp.float32)       # nn.Identity()
        bi = jnp.zeros((Cout,), jnp.float32)
    else:
        ki1, ki2 = jax.random.split(jax.random.fold_in(key, 99))
        si = 1.0 / np.sqrt(Cin)
        wi = jax.random.normal(ki1, (Cin, Cout), jnp.float32) * si         # 1x1 conv
        bi = jax.random.normal(ki2, (Cout,), jnp.float32) * si
    return (w1, b1, g1, be1, w2, b2, g2, be2, wi, bi)


if __name__ == "__main__":
    key = jax.random.PRNGKey(0)
    kx, kp = jax.random.split(key)

    # projection-skip case (in_channels != out_channels -> 1x1 conv identity)
    N, Cin, Cout, H, W = 2, 4, 8, 16, 16
    x = jax.random.normal(kx, (N, Cin, H, W), jnp.float32)
    params = make_params(kp, Cin, Cout)
    out = jax.block_until_ready(residual_block_pallas(x, params))
    assert out.shape == (N, Cout, H, W), out.shape
    ref = jax.block_until_ready(residual_block_reference(x, params))
    rel = float(jnp.linalg.norm(out - ref) / (jnp.linalg.norm(ref) + 1e-12))
    assert rel < 5e-2, f"projection case mismatch vs reference: rel L2 err = {rel}"

    # identity-skip case (in_channels == out_channels -> nn.Identity fast path)
    Cin2 = Cout2 = 8
    x_id = jax.random.normal(jax.random.fold_in(kx, 1), (N, Cin2, H, W), jnp.float32)
    params_id = make_params(jax.random.fold_in(kp, 1), Cin2, Cout2)
    out_id = jax.block_until_ready(residual_block_pallas(x_id, params_id))
    ref_id = jax.block_until_ready(residual_block_reference(x_id, params_id))
    rel_id = float(jnp.linalg.norm(out_id - ref_id) / (jnp.linalg.norm(ref_id) + 1e-12))
    assert rel_id < 5e-2, f"identity case mismatch vs reference: rel L2 err = {rel_id}"

    print("KERNEL_OK")
</pallas_src>

<mosaic_0001>
module attributes {stable_mosaic.version = 11 : i64} {
  func.func @kernel(%arg0: memref<32x64xf32, #tpu.memory_space<vmem>>, %arg1: memref<3x64x128xbf16, #tpu.memory_space<vmem>>, %arg2: memref<1x8xf32, #tpu.memory_space<vmem>>, %arg3: memref<1x8xf32, #tpu.memory_space<vmem>>, %arg4: memref<3x128x128xbf16, #tpu.memory_space<vmem>>, %arg5: memref<1x8xf32, #tpu.memory_space<vmem>>, %arg6: memref<1x8xf32, #tpu.memory_space<vmem>>, %arg7: memref<128x8xf32, #tpu.memory_space<vmem>>, %arg8: memref<8x128xf32, #tpu.memory_space<vmem>>, %arg9: memref<64x128xbf16, #tpu.memory_space<vmem>>, %arg10: memref<1x128xf32, #tpu.memory_space<vmem>>, %arg11: memref<32x128xf32, #tpu.memory_space<vmem>>) attributes {dimension_semantics = [], scalar_prefetch = 0 : i64, scratch_operands = 0 : i64, tpu.core_type = #tpu.core_type<tc>} {
    %c0 = arith.constant 0 : index
    %c0_0 = arith.constant 0 : index
    %0 = vector.load %arg0[%c0, %c0_0] : memref<32x64xf32, #tpu.memory_space<vmem>>, vector<32x64xf32>
    %1 = arith.truncf %0 : vector<32x64xf32> to vector<32x64xbf16>
    %2 = tpu.iota {dimensions = array<i32: 0>} : vector<32x1xi32>
    %c16_i32 = arith.constant 16 : i32
    %c0_i32 = arith.constant 0 : i32
    %3 = arith.cmpi eq, %c16_i32, %c0_i32 : i32
    %c1_i32 = arith.constant 1 : i32
    %4 = arith.select %3, %c1_i32, %c16_i32 : i32
    %5 = vector.broadcast %4 : i32 to vector<32x1xi32>
    %6 = arith.remsi %2, %5 : vector<32x1xi32>
    %c0_i32_1 = arith.constant 0 : i32
    %7 = vector.broadcast %c0_i32_1 : i32 to vector<32x1xi32>
    %8 = arith.cmpi ne, %6, %7 : vector<32x1xi32>
    %c0_i32_2 = arith.constant 0 : i32
    %9 = vector.broadcast %c0_i32_2 : i32 to vector<32x1xi32>
    %10 = arith.cmpi slt, %6, %9 : vector<32x1xi32>
    %c0_i32_3 = arith.constant 0 : i32
    %11 = arith.cmpi slt, %4, %c0_i32_3 : i32
    %12 = vector.broadcast %11 : i1 to vector<32x1xi1>
    %13 = vector.broadcast %12 : vector<32x1xi1> to vector<32x1xi1>
    %14 = arith.xori %10, %13 : vector<32x1xi1>
    %15 = arith.andi %14, %8 : vector<32x1xi1>
    %16 = vector.broadcast %4 : i32 to vector<32x1xi32>
    %17 = arith.addi %6, %16 : vector<32x1xi32>
    %18 = arith.select %15, %17, %6 : vector<32x1xi1>, vector<32x1xi32>
    %c1_i32_4 = arith.constant 1 : i32
    %19 = vector.broadcast %c1_i32_4 : i32 to vector<32x1xi32>
    %20 = arith.cmpi sge, %18, %19 : vector<32x1xi32>
    %c14_i32 = arith.constant 14 : i32
    %21 = vector.broadcast %c14_i32 : i32 to vector<32x1xi32>
    %22 = arith.cmpi sle, %18, %21 : vector<32x1xi32>
    %c1_i32_5 = arith.constant 1 : i32
    %23 = tpu.dynamic_rotate %0 by %c1_i32_5 dim 0 : vector<32x64xf32>, i32 -> vector<32x64xf32>
    %cst = arith.constant 0.000000e+00 : f32
    %24 = vector.shape_cast %20 : vector<32x1xi1> to vector<32x1xi1>
    %25 = vector.broadcast %24 : vector<32x1xi1> to vector<32x64xi1>
    %26 = vector.broadcast %cst : f32 to vector<32x64xf32>
    %27 = arith.select %25, %23, %26 : vector<32x64xi1>, vector<32x64xf32>
    %c31_i32 = arith.constant 31 : i32
    %28 = tpu.dynamic_rotate %0 by %c31_i32 dim 0 : vector<32x64xf32>, i32 -> vector<32x64xf32>
    %cst_6 = arith.constant 0.000000e+00 : f32
    %29 = vector.shape_cast %22 : vector<32x1xi1> to vector<32x1xi1>
    %30 = vector.broadcast %29 : vector<32x1xi1> to vector<32x64xi1>
    %31 = vector.broadcast %cst_6 : f32 to vector<32x64xf32>
    %32 = arith.select %30, %28, %31 : vector<32x64xi1>, vector<32x64xf32>
    %c1 = arith.constant 1 : index
    %c0_7 = arith.constant 0 : index
    %c0_8 = arith.constant 0 : index
    %33 = vector.load %arg1[%c1, %c0_7, %c0_8] : memref<3x64x128xbf16, #tpu.memory_space<vmem>>, vector<1x64x128xbf16>
    %34 = vector.shape_cast %33 : vector<1x64x128xbf16> to vector<64x128xbf16>
    %cst_9 = arith.constant dense<0.000000e+00> : vector<32x128xf32>
    %35 = tpu.matmul %1, %34, %cst_9 {dimension_numbers = #tpu.dot_dimension_numbers<[1], [0], [0], [1], [0, 0, 1, 1], [], []>} : vector<32x64xbf16>, vector<64x128xbf16>, vector<32x128xf32> -> vector<32x128xf32>
    %36 = arith.truncf %27 : vector<32x64xf32> to vector<32x64xbf16>
    %c0_10 = arith.constant 0 : index
    %c0_11 = arith.constant 0 : index
    %c0_12 = arith.constant 0 : index
    %37 = vector.load %arg1[%c0_10, %c0_11, %c0_12] : memref<3x64x128xbf16, #tpu.memory_space<vmem>>, vector<1x64x128xbf16>
    %38 = vector.shape_cast %37 : vector<1x64x128xbf16> to vector<64x128xbf16>
    %cst_13 = arith.constant dense<0.000000e+00> : vector<32x128xf32>
    %39 = tpu.matmul %36, %38, %cst_13 {dimension_numbers = #tpu.dot_dimension_numbers<[1], [0], [0], [1], [0, 0, 1, 1], [], []>} : vector<32x64xbf16>, vector<64x128xbf16>, vector<32x128xf32> -> vector<32x128xf32>
    %40 = arith.addf %35, %39 : vector<32x128xf32>
    %41 = arith.truncf %32 : vector<32x64xf32> to vector<32x64xbf16>
    %c2 = arith.constant 2 : index
    %c0_14 = arith.constant 0 : index
    %c0_15 = arith.constant 0 : index
    %42 = vector.load %arg1[%c2, %c0_14, %c0_15] : memref<3x64x128xbf16, #tpu.memory_space<vmem>>, vector<1x64x128xbf16>
    %43 = vector.shape_cast %42 : vector<1x64x128xbf16> to vector<64x128xbf16>
    %cst_16 = arith.constant dense<0.000000e+00> : vector<32x128xf32>
    %44 = tpu.matmul %41, %43, %cst_16 {dimension_numbers = #tpu.dot_dimension_numbers<[1], [0], [0], [1], [0, 0, 1, 1], [], []>} : vector<32x64xbf16>, vector<64x128xbf16>, vector<32x128xf32> -> vector<32x128xf32>
    %45 = arith.addf %40, %44 : vector<32x128xf32>
    %cst_17 = arith.constant dense<0.000000e+00> : vector<128xf32>
    %46 = vector.multi_reduction <add>, %45, %cst_17 [0] : vector<32x128xf32> to vector<128xf32>
    %47 = vector.shape_cast %46 : vector<128xf32> to vector<1x128xf32>
    %48 = arith.mulf %45, %45 : vector<32x128xf32>
    %cst_18 = arith.constant dense<0.000000e+00> : vector<128xf32>
    %49 = vector.multi_reduction <add>, %48, %cst_18 [0] : vector<32x128xf32> to vector<128xf32>
    %50 = vector.shape_cast %49 : vector<128xf32> to vector<1x128xf32>
    %51 = tpu.concatenate %47, %50 in 0 : vector<1x128xf32>, vector<1x128xf32> -> vector<2x128xf32>
    %c0_19 = arith.constant 0 : index
    %c0_20 = arith.constant 0 : index
    %52 = vector.load %arg7[%c0_19, %c0_20] : memref<128x8xf32, #tpu.memory_space<vmem>>, vector<128x8xf32>
    %cst_21 = arith.constant dense<0.000000e+00> : vector<2x8xf32>
    %53 = tpu.matmul %51, %52, %cst_21 {dimension_numbers = #tpu.dot_dimension_numbers<[1], [0], [0], [1], [0, 0, 1, 1], [], []>} : vector<2x128xf32>, vector<128x8xf32>, vector<2x8xf32> -> vector<2x8xf32>
    %54 = vector.extract_strided_slice %53 {offsets = [0, 0], sizes = [1, 8], strides = [1, 1]} : vector<2x8xf32> to vector<1x8xf32>
    %55 = vector.extract_strided_slice %53 {offsets = [1, 0], sizes = [1, 8], strides = [1, 1]} : vector<2x8xf32> to vector<1x8xf32>
    %56 = arith.mulf %54, %54 : vector<1x8xf32>
    %57 = arith.subf %55, %56 : vector<1x8xf32>
    %c0_22 = arith.constant 0 : index
    %c0_23 = arith.constant 0 : index
    %58 = vector.load %arg2[%c0_22, %c0_23] : memref<1x8xf32, #tpu.memory_space<vmem>>, vector<1x8xf32>
    %cst_24 = arith.constant 9.99999974E-6 : f32
    %59 = vector.broadcast %cst_24 : f32 to vector<1x8xf32>
    %60 = arith.addf %57, %59 : vector<1x8xf32>
    %61 = math.rsqrt %60 : vector<1x8xf32>
    %62 = arith.mulf %58, %61 : vector<1x8xf32>
    %c0_25 = arith.constant 0 : index
    %c0_26 = arith.constant 0 : index
    %63 = vector.load %arg3[%c0_25, %c0_26] : memref<1x8xf32, #tpu.memory_space<vmem>>, vector<1x8xf32>
    %64 = arith.mulf %54, %62 : vector<1x8xf32>
    %65 = arith.subf %63, %64 : vector<1x8xf32>
    %66 = tpu.concatenate %62, %65 in 0 : vector<1x8xf32>, vector<1x8xf32> -> vector<2x8xf32>
    %c0_27 = arith.constant 0 : index
    %c0_28 = arith.constant 0 : index
    %67 = vector.load %arg8[%c0_27, %c0_28] : memref<8x128xf32, #tpu.memory_space<vmem>>, vector<8x128xf32>
    %cst_29 = arith.constant dense<0.000000e+00> : vector<2x128xf32>
    %68 = tpu.matmul %66, %67, %cst_29 {dimension_numbers = #tpu.dot_dimension_numbers<[1], [0], [0], [1], [0, 0, 1, 1], [], []>} : vector<2x8xf32>, vector<8x128xf32>, vector<2x128xf32> -> vector<2x128xf32>
    %69 = vector.extract_strided_slice %68 {offsets = [0, 0], sizes = [1, 128], strides = [1, 1]} : vector<2x128xf32> to vector<1x128xf32>
    %70 = vector.broadcast %69 : vector<1x128xf32> to vector<32x128xf32>
    %71 = arith.mulf %45, %70 : vector<32x128xf32>
    %72 = vector.extract_strided_slice %68 {offsets = [1, 0], sizes = [1, 128], strides = [1, 1]} : vector<2x128xf32> to vector<1x128xf32>
    %73 = vector.broadcast %72 : vector<1x128xf32> to vector<32x128xf32>
    %74 = arith.addf %71, %73 : vector<32x128xf32>
    %cst_30 = arith.constant 0.000000e+00 : f32
    %75 = vector.broadcast %cst_30 : f32 to vector<32x128xf32>
    %76 = arith.maximumf %74, %75 : vector<32x128xf32>
    %77 = arith.truncf %76 : vector<32x128xf32> to vector<32x128xbf16>
    %c1_i32_31 = arith.constant 1 : i32
    %78 = tpu.dynamic_rotate %76 by %c1_i32_31 dim 0 : vector<32x128xf32>, i32 -> vector<32x128xf32>
    %cst_32 = arith.constant 0.000000e+00 : f32
    %79 = vector.shape_cast %20 : vector<32x1xi1> to vector<32x1xi1>
    %80 = vector.broadcast %79 : vector<32x1xi1> to vector<32x128xi1>
    %81 = vector.broadcast %cst_32 : f32 to vector<32x128xf32>
    %82 = arith.select %80, %78, %81 : vector<32x128xi1>, vector<32x128xf32>
    %c31_i32_33 = arith.constant 31 : i32
    %83 = tpu.dynamic_rotate %76 by %c31_i32_33 dim 0 : vector<32x128xf32>, i32 -> vector<32x128xf32>
    %cst_34 = arith.constant 0.000000e+00 : f32
    %84 = vector.shape_cast %22 : vector<32x1xi1> to vector<32x1xi1>
    %85 = vector.broadcast %84 : vector<32x1xi1> to vector<32x128xi1>
    %86 = vector.broadcast %cst_34 : f32 to vector<32x128xf32>
    %87 = arith.select %85, %83, %86 : vector<32x128xi1>, vector<32x128xf32>
    %c1_35 = arith.constant 1 : index
    %c0_36 = arith.constant 0 : index
    %c0_37 = arith.constant 0 : index
    %88 = vector.load %arg4[%c1_35, %c0_36, %c0_37] : memref<3x128x128xbf16, #tpu.memory_space<vmem>>, vector<1x128x128xbf16>
    %89 = vector.shape_cast %88 : vector<1x128x128xbf16> to vector<128x128xbf16>
    %cst_38 = arith.constant dense<0.000000e+00> : vector<32x128xf32>
    %90 = tpu.matmul %77, %89, %cst_38 {dimension_numbers = #tpu.dot_dimension_numbers<[1], [0], [0], [1], [0, 0, 1, 1], [], []>} : vector<32x128xbf16>, vector<128x128xbf16>, vector<32x128xf32> -> vector<32x128xf32>
    %91 = arith.truncf %82 : vector<32x128xf32> to vector<32x128xbf16>
    %c0_39 = arith.constant 0 : index
    %c0_40 = arith.constant 0 : index
    %c0_41 = arith.constant 0 : index
    %92 = vector.load %arg4[%c0_39, %c0_40, %c0_41] : memref<3x128x128xbf16, #tpu.memory_space<vmem>>, vector<1x128x128xbf16>
    %93 = vector.shape_cast %92 : vector<1x128x128xbf16> to vector<128x128xbf16>
    %cst_42 = arith.constant dense<0.000000e+00> : vector<32x128xf32>
    %94 = tpu.matmul %91, %93, %cst_42 {dimension_numbers = #tpu.dot_dimension_numbers<[1], [0], [0], [1], [0, 0, 1, 1], [], []>} : vector<32x128xbf16>, vector<128x128xbf16>, vector<32x128xf32> -> vector<32x128xf32>
    %95 = arith.addf %90, %94 : vector<32x128xf32>
    %96 = arith.truncf %87 : vector<32x128xf32> to vector<32x128xbf16>
    %c2_43 = arith.constant 2 : index
    %c0_44 = arith.constant 0 : index
    %c0_45 = arith.constant 0 : index
    %97 = vector.load %arg4[%c2_43, %c0_44, %c0_45] : memref<3x128x128xbf16, #tpu.memory_space<vmem>>, vector<1x128x128xbf16>
    %98 = vector.shape_cast %97 : vector<1x128x128xbf16> to vector<128x128xbf16>
    %cst_46 = arith.constant dense<0.000000e+00> : vector<32x128xf32>
    %99 = tpu.matmul %96, %98, %cst_46 {dimension_numbers = #tpu.dot_dimension_numbers<[1], [0], [0], [1], [0, 0, 1, 1], [], []>} : vector<32x128xbf16>, vector<128x128xbf16>, vector<32x128xf32> -> vector<32x128xf32>
    %100 = arith.addf %95, %99 : vector<32x128xf32>
    %cst_47 = arith.constant dense<0.000000e+00> : vector<128xf32>
    %101 = vector.multi_reduction <add>, %100, %cst_47 [0] : vector<32x128xf32> to vector<128xf32>
    %102 = vector.shape_cast %101 : vector<128xf32> to vector<1x128xf32>
    %103 = arith.mulf %100, %100 : vector<32x128xf32>
    %cst_48 = arith.constant dense<0.000000e+00> : vector<128xf32>
    %104 = vector.multi_reduction <add>, %103, %cst_48 [0] : vector<32x128xf32> to vector<128xf32>
    %105 = vector.shape_cast %104 : vector<128xf32> to vector<1x128xf32>
    %106 = tpu.concatenate %102, %105 in 0 : vector<1x128xf32>, vector<1x128xf32> -> vector<2x128xf32>
    %c0_49 = arith.constant 0 : index
    %c0_50 = arith.constant 0 : index
    %107 = vector.load %arg7[%c0_49, %c0_50] : memref<128x8xf32, #tpu.memory_space<vmem>>, vector<128x8xf32>
    %cst_51 = arith.constant dense<0.000000e+00> : vector<2x8xf32>
    %108 = tpu.matmul %106, %107, %cst_51 {dimension_numbers = #tpu.dot_dimension_numbers<[1], [0], [0], [1], [0, 0, 1, 1], [], []>} : vector<2x128xf32>, vector<128x8xf32>, vector<2x8xf32> -> vector<2x8xf32>
    %109 = vector.extract_strided_slice %108 {offsets = [0, 0], sizes = [1, 8], strides = [1, 1]} : vector<2x8xf32> to vector<1x8xf32>
    %110 = vector.extract_strided_slice %108 {offsets = [1, 0], sizes = [1, 8], strides = [1, 1]} : vector<2x8xf32> to vector<1x8xf32>
    %111 = arith.mulf %109, %109 : vector<1x8xf32>
    %112 = arith.subf %110, %111 : vector<1x8xf32>
    %c0_52 = arith.constant 0 : index
    %c0_53 = arith.constant 0 : index
    %113 = vector.load %arg5[%c0_52, %c0_53] : memref<1x8xf32, #tpu.memory_space<vmem>>, vector<1x8xf32>
    %cst_54 = arith.constant 9.99999974E-6 : f32
    %114 = vector.broadcast %cst_54 : f32 to vector<1x8xf32>
    %115 = arith.addf %112, %114 : vector<1x8xf32>
    %116 = math.rsqrt %115 : vector<1x8xf32>
    %117 = arith.mulf %113, %116 : vector<1x8xf32>
    %c0_55 = arith.constant 0 : index
    %c0_56 = arith.constant 0 : index
    %118 = vector.load %arg6[%c0_55, %c0_56] : memref<1x8xf32, #tpu.memory_space<vmem>>, vector<1x8xf32>
    %119 = arith.mulf %109, %117 : vector<1x8xf32>
    %120 = arith.subf %118, %119 : vector<1x8xf32>
    %121 = tpu.concatenate %117, %120 in 0 : vector<1x8xf32>, vector<1x8xf32> -> vector<2x8xf32>
    %c0_57 = arith.constant 0 : index
    %c0_58 = arith.constant 0 : index
    %122 = vector.load %arg8[%c0_57, %c0_58] : memref<8x128xf32, #tpu.memory_space<vmem>>, vector<8x128xf32>
    %cst_59 = arith.constant dense<0.000000e+00> : vector<2x128xf32>
    %123 = tpu.matmul %121, %122, %cst_59 {dimension_numbers = #tpu.dot_dimension_numbers<[1], [0], [0], [1], [0, 0, 1, 1], [], []>} : vector<2x8xf32>, vector<8x128xf32>, vector<2x128xf32> -> vector<2x128xf32>
    %124 = vector.extract_strided_slice %123 {offsets = [0, 0], sizes = [1, 128], strides = [1, 1]} : vector<2x128xf32> to vector<1x128xf32>
    %125 = vector.broadcast %124 : vector<1x128xf32> to vector<32x128xf32>
    %126 = arith.mulf %100, %125 : vector<32x128xf32>
    %127 = vector.extract_strided_slice %123 {offsets = [1, 0], sizes = [1, 128], strides = [1, 1]} : vector<2x128xf32> to vector<1x128xf32>
    %128 = vector.broadcast %127 : vector<1x128xf32> to vector<32x128xf32>
    %129 = arith.addf %126, %128 : vector<32x128xf32>
    %c0_60 = arith.constant 0 : index
    %c0_61 = arith.constant 0 : index
    %130 = vector.load %arg9[%c0_60, %c0_61] : memref<64x128xbf16, #tpu.memory_space<vmem>>, vector<64x128xbf16>
    %cst_62 = arith.constant dense<0.000000e+00> : vector<32x128xf32>
    %131 = tpu.matmul %1, %130, %cst_62 {dimension_numbers = #tpu.dot_dimension_numbers<[1], [0], [0], [1], [0, 0, 1, 1], [], []>} : vector<32x64xbf16>, vector<64x128xbf16>, vector<32x128xf32> -> vector<32x128xf32>
    %c0_63 = arith.constant 0 : index
    %c0_64 = arith.constant 0 : index
    %132 = vector.load %arg10[%c0_63, %c0_64] : memref<1x128xf32, #tpu.memory_space<vmem>>, vector<1x128xf32>
    %133 = vector.broadcast %132 : vector<1x128xf32> to vector<32x128xf32>
    %134 = arith.addf %131, %133 : vector<32x128xf32>
    %135 = arith.addf %129, %134 : vector<32x128xf32>
    %cst_65 = arith.constant 0.000000e+00 : f32
    %136 = vector.broadcast %cst_65 : f32 to vector<32x128xf32>
    %137 = arith.maximumf %135, %136 : vector<32x128xf32>
    %c0_66 = arith.constant 0 : index
    %c0_67 = arith.constant 0 : index
    %138 = vector.load %arg11[%c0_66, %c0_67] : memref<32x128xf32, #tpu.memory_space<vmem>>, vector<32x128xf32>
    tpu.vector_store %arg11[%c0_66, %c0_67], %137 {strides = array<i32>} : memref<32x128xf32, #tpu.memory_space<vmem>>, vector<32x128xf32>,
    return
  }
}

</mosaic_0001>

<bundles_post_ra>
// kernel: tpu_custom_call.1
= control target key start
LH: loop header
LB: loop body
LE: loop exit
PB: predicated region body
PF: predicated region fallthrough
CT: control target
= control target key end

     0   :  { %16 = vsyncpa [#allocation3], 0  ;;  %s1753_s0 = inlined_call_operand.vmem [shape: f32[32,64], index: 0, kind: input, shape index: {}]   ;;  %s1754_s1 = inlined_call_operand.vmem [shape: bf16[3,64,128], index: 1, kind: input, shape index: {}]   ;;  %s1755_s2 = inlined_call_operand.vmem [shape: f32[1,8], index: 2, kind: input, shape index: {}]   ;;  %s1756_s3 = inlined_call_operand.hbm [shape: f32[1,8], index: 3, kind: input, shape index: {}]   ;;  %s1757_s4 = inlined_call_operand.hbm [shape: bf16[3,128,128], index: 4, kind: input, shape index: {}]   ;;  %s1758_s5 = inlined_call_operand.vmem [shape: f32[1,8], index: 5, kind: input, shape index: {}]   ;;  %s1759_s6 = inlined_call_operand.vmem [shape: f32[1,8], index: 6, kind: input, shape index: {}]   ;;  %s1760_s7 = inlined_call_operand.vmem [shape: f32[128,8], index: 7, kind: input, shape index: {}]   ;;  %s1761_s8 = inlined_call_operand.vmem [shape: f32[8,128], index: 8, kind: input, shape index: {}]   ;;  %s1762_s9 = inlined_call_operand.hbm [shape: bf16[64,128], index: 9, kind: input, shape index: {}]   ;;  %s1763_s10 = inlined_call_operand.vmem [shape: f32[1,128], index: 10, kind: input, shape index: {}]   ;;  %s1764_s11 = inlined_call_operand.hbm [shape: f32[32,128], index: 11, kind: output, shape index: {}]  }
   0x1   :  { %17 = vsyncpa [#allocation6], 0  ;;  %s40_s19 = sshll.u32 %s1757_s4, 4  ;;  %s41_s19 = int_to_ptr.hbm [resolvable:$true] %s40_s19 }
   0x2   :  { %18 = vsyncpa [#allocation4], 0  ;;  %s1341_s20 = smov [#allocation5]   ;;  %s30_s24 = sshll.u32 %s1756_s3, 4  ;;  %s31_s24 = int_to_ptr.hbm [resolvable:$true] %s30_s24 }
   0x3   :  { %s42_s21 = sshll.u32 %s1341_s20, 4  ;;  %s1342_s25 = smov 64   ;;  %s43_s21 = int_to_ptr.vmem [resolvable:$true] %s42_s21 }
   0x4   :  { %s1343_s26 = smov 4   ;;  %s1344_s27 = smov [#allocation2]  }
   0x5   :  { %48 = dma.hbm_to_vmem [thread:$0]  %s41_s19, 3072, %s43_s21, [#allocation6], %s1342_s25, %s1342_s25, %s1343_s26  }
   0x6   :  { %s32_s28 = sshll.u32 %s1344_s27, 4  ;;  %s61_s12 = sshll.u32 %s1762_s9, 4  ;;  %s33_s28 = int_to_ptr.vmem [resolvable:$true] %s32_s28  ;;  %s62_s12 = int_to_ptr.hbm [resolvable:$true] %s61_s12 }
   0x7   :  { %35 = dma.hbm_to_vmem [thread:$0]  %s31_s24, 16, %s33_s28, [#allocation3]  }
   0x8   :  { %s1345_s4 = smov [#allocation7]  }
   0x9   :  { %s63_s13 = sshll.u32 %s1345_s4, 4  ;;  %s64_s13 = int_to_ptr.vmem [resolvable:$true] %s63_s13 }
   0xa   :  { %69 = dma.hbm_to_vmem [thread:$0]  %s62_s12, 512, %s64_s13, [#allocation6], %s1342_s25, %s1342_s25, %s1343_s26  }
   0xb   :  { %1335 = dma.done.wait [#allocation3], 16  }
   0xc   :  { %1336 = vsyncadd [#allocation3], 4294967280 }
   0xd   :  { %1337 = dma.done.wait [#allocation6], 3584  }
   0xe   :  { %1338 = vsyncadd [#allocation6], 4294963712  ;;  %v91_v0 = vlaneseq  ;;  %v1188_v2 = vld [vmem:[%s1754_s1 + $0x18] sm:$0xff]  ;;  %v1187_v6 = vld [vmem:[%s1754_s1 + $0x10] sm:$0xff]  ;;  %vm237_vm4 = vcmask 523264   ;;  %vm398_vm7 = vcmask 1040384  }
   0xf   :  { %v1184_v3 = vld [vmem:[%s1754_s1 + $0x38] sm:$0xff]  ;;  %248 = vmatpush.bf16.msra.mxu0 %v1188_v2  ;;  %v1183_v7 = vld [vmem:[%s1754_s1 + $0x30] sm:$0xff]  ;;  %v85_v10 = vld [vmem:[%s1753_s0] sm:$0xff]  ;;  %vm467_vm11 = vcmask 64512   ;;  %vm1346_vm12 = vmmov 1   ;;  %s969_s15 = sshll.u32 %s1764_s11, 4  ;;  %s970_s15 = int_to_ptr.hbm [resolvable:$true] %s969_s15 }
  0x10   :  { %v1419_v1 = vshrl.u32 %v91_v0, 7  ;;  %v1192_v4 = vld [vmem:[%s1754_s1 + $0x58] sm:$0xff]  ;;  %297 = vmatpush.bf16.msra.mxu1 %v1184_v3  ;;  %v1191_v8 = vld [vmem:[%s1754_s1 + $0x50] sm:$0xff]  ;;  %v86_v11 = vld [vmem:[%s1753_s0 + $0x8] sm:$0xff]  ;;  %v152_v14 = vrot.slane %v85_v10, 7  ;;  %v173_v25 = vrot.slane %v85_v10, 1 }
  0x11   :  { %357 = vmatpush.bf16.msra.mxu2 %v1192_v4  ;;  %v88_v12 = vld [vmem:[%s1753_s0 + $0x18] sm:$0xff]  ;;  %v87_v16 = vld [vmem:[%s1753_s0 + $0x10] sm:$0xff]  ;;  %v1186_v17 = vld [vmem:[%s1754_s1 + $0x8] sm:$0xff]  ;;  %v153_v19 = vrot.slane %v86_v11, 7  ;;  %v174_v20 = vrot.slane %v86_v11, 1  ;;  %v1493_v36 = vpack.c.bf16 %v86_v11, %v85_v10  ;;  %s1348_s9 = smov 128  }
  0x12   :  { %v93_v5 = vadd.s32 8, %v1419_v1  ;;  %v100_v9 = vand.u32 15, %v1419_v1  ;;  %vm156_vm0 = vcmp.lt.s32.totalorder %v1419_v1, 1  ;;  %v155_v15 = vrot.slane %v88_v12, 7  ;;  %v1182_v18 = vld [vmem:[%s1754_s1 + $0x28] sm:$0xff]  ;;  %v1185_v28 = vld [vmem:[%s1754_s1] sm:$0xff] }
  0x13   :  { %vm177_vm1 = vcmp.lt.s32.totalorder %v1419_v1, 7  ;;  %249 = vmatpush.bf16.msra.mxu0 %v1187_v6  ;;  %v175_v21 = vrot.slane %v87_v16, 1  ;;  %v1190_v22 = vld [vmem:[%s1754_s1 + $0x48] sm:$0xff]  ;;  %v1181_v29 = vld [vmem:[%s1754_s1 + $0x20] sm:$0xff]  ;;  %v159_v30 = vsel %vm156_vm0, %v152_v14, %v153_v19  ;;  %v94_v38 = vadd.s32 16, %v1419_v1  ;;  %v1530_v55 = vld [vmem:[%s1760_s7 + $0x78] sm:$0xff] }
  0x14   :  { %v107_v13 = vand.u32 15, %v93_v5  ;;  %298 = vmatpush.bf16.msra.mxu1 %v1183_v7  ;;  %vm1464_vm2 = vcmp.ge.s32.totalorder %v100_v9, 1  ;;  %v160_v24 = vsel %vm156_vm0, %v155_v15, %v152_v14  ;;  %v1189_v32 = vld [vmem:[%s1754_s1 + $0x40] sm:$0xff]  ;;  %v180_v33 = vsel %vm177_vm1, %v173_v25, %v174_v20  ;;  %416 = vmatpush.msra.mxu3 %v1530_v55  ;;  %v1536_v56 = vld [vmem:[%s1760_s7 + $0x70] sm:$0xff]  ;;  %v1542_v57 = vld [vmem:[%s1760_s7 + $0x68] sm:$0xff]  ;;  %s1349_s0 = smov 8  }
  0x15   :  { %358 = vmatpush.bf16.msra.mxu2 %v1191_v8  ;;  %v179_v27 = vsel %vm177_vm1, %v174_v20, %v175_v21  ;;  %v169_v31 = vsel %vm1464_vm2, %v160_v24, 0.0  ;;  %v95_v39 = vadd.s32 24, %v1419_v1  ;;  %v114_v40 = vand.u32 15, %v94_v38  ;;  %v1548_v58 = vld [vmem:[%s1760_s7 + $0x60] sm:$0xff]  ;;  %v1554_v59 = vld [vmem:[%s1760_s7 + $0x58] sm:$0xff]  ;;  %v1560_v60 = vld [vmem:[%s1760_s7 + $0x50] sm:$0xff] }
  0x16   :  { %vm1470_vm3 = vcmp.le.s32.totalorder %v107_v13, 14  ;;  %v203_v35 = vpack.c.bf16 %v159_v30, %v169_v31  ;;  %v154_v41 = vrot.slane %v87_v16, 7  ;;  %v176_v43 = vrot.slane %v88_v12, 1  ;;  %417 = vmatpush.msra.mxu3 %v1536_v56  ;;  %v1566_v61 = vld [vmem:[%s1760_s7 + $0x48] sm:$0xff]  ;;  %v1572_v0 = vld [vmem:[%s1760_s7 + $0x40] sm:$0xff]  ;;  %v1578_v2 = vld [vmem:[%s1760_s7 + $0x38] sm:$0xff] }
  0x17   :  { %250 = vmatpush.bf16.msra.mxu0 %v1186_v17  ;;  %v191_v34 = vsel %vm1470_vm3, %v179_v27, 0.0  ;;  %v121_v42 = vand.u32 15, %v95_v39  ;;  %vm1501_vm5 = vcmp.ge.s32.totalorder %v114_v40, 1  ;;  %v1521_v53 = vpack.c.bf16 %v88_v12, %v87_v16  ;;  %v1584_v3 = vld [vmem:[%s1760_s7 + $0x30] sm:$0xff]  ;;  %v1590_v4 = vld [vmem:[%s1760_s7 + $0x28] sm:$0xff]  ;;  %v1595_v6 = vld [vmem:[%s1760_s7 + $0x20] sm:$0xff] }
  0x18   :  { %299 = vmatpush.bf16.msra.mxu1 %v1182_v18  ;;  %v312_v37 = vpack.c.bf16 %v191_v34, %v180_v33  ;;  %v158_v45 = vsel %vm156_vm0, %v153_v19, %v154_v41  ;;  %v181_v47 = vsel %vm177_vm1, %v176_v43, %v173_v25  ;;  %v157_v48 = vsel %vm156_vm0, %v154_v41, %v155_v15  ;;  %v1601_v9 = vld [vmem:[%s1760_s7 + $0x18] sm:$0xff]  ;;  %v1607_v10 = vld [vmem:[%s1760_s7 + $0x10] sm:$0xff]  ;;  %v1613_v11 = vld [vmem:[%s1760_s7 + $0x8] sm:$0xff] }
  0x19   :  { %359 = vmatpush.bf16.msra.mxu2 %v1190_v22  ;;  %vm1507_vm6 = vcmp.le.s32.totalorder %v121_v42, 14  ;;  %v171_v49 = vsel %vm1501_vm5, %v158_v45, 0.0  ;;  %v178_v50 = vsel %vm177_vm1, %v175_v21, %v176_v43  ;;  %418 = vmatpush.msra.mxu3 %v1542_v57  ;;  %v1619_v13 = vld [vmem:[%s1760_s7] sm:$0xff]  ;;  %vm1086_vm13 = vmpackc.low %vm1346_vm12, %vm1464_vm2 }
  0x1a   :  { %v193_v51 = vsel %vm1507_vm6, %v181_v47, 0.0  ;;  %v204_v52 = vpack.c.bf16 %v157_v48, %v171_v49  ;;  %vm1156_vm14 = vmpackc.low %vm1470_vm3, %vm1346_vm12 }
  0x1b   :  { %251 = vmatpush.bf16.msra.mxu0 %v1185_v28  ;;  %v313_v54 = vpack.c.bf16 %v193_v51, %v178_v50  ;;  %419 = vmatpush.msra.mxu3 %v1548_v58  ;;  %vm1089_vm15 = vmpackc.low %vm1346_vm12, %vm1501_vm5 }
  0x1c   :  { %300 = vmatpush.bf16.msra.mxu1 %v1181_v29  ;;  %vm1159_vm2 = vmpackc.low %vm1507_vm6, %vm1346_vm12 }
  0x1d   :  { %360 = vmatpush.bf16.msra.mxu2 %v1189_v32  ;;  %420 = vmatpush.msra.mxu3 %v1554_v59 }
  0x1e   :  { %1007 = vmatmul.msk.bf16.vlgmr.msra.gmra.mxu0 %vm237_vm4, %v203_v35 }
  0x1f   :  { %1025 = vmatmul.msk.bf16.vlgmr.msra.gmra.mxu1 %vm237_vm4, %v1493_v36  ;;  %421 = vmatpush.msra.mxu3 %v1560_v60 }
  0x20   :  { %1051 = vmatmul.msk.bf16.vlgmr.msra.gmra.mxu2 %vm237_vm4, %v312_v37 }
  0x21   :  { %422 = vmatpush.msra.mxu3 %v1566_v61 }
  0x23   :  { %423 = vmatpush.msra.mxu3 %v1572_v0 }
  0x25   :  { %424 = vmatpush.msra.mxu3 %v1578_v2 }
  0x27   :  { %425 = vmatpush.msra.mxu3 %v1584_v3 }
  0x29   :  { %426 = vmatpush.msra.mxu3 %v1590_v4 }
  0x2b   :  { %427 = vmatpush.msra.mxu3 %v1595_v6 }
  0x2d   :  { %428 = vmatpush.msra.mxu3 %v1601_v9 }
  0x2e   :  { %1008 = vmatmul.msk.bf16.gmra.mxu0 %vm237_vm4, %v204_v52 }
  0x2f   :  { %1026 = vmatmul.msk.bf16.gmra.mxu1 %vm237_vm4, %v1521_v53  ;;  %429 = vmatpush.msra.mxu3 %v1607_v10 }
  0x30   :  { %1052 = vmatmul.msk.bf16.gmra.mxu2 %vm237_vm4, %v313_v54 }
  0x31   :  { %430 = vmatpush.msra.mxu3 %v1613_v11 }
  0x33   :  { %431 = vmatpush.msra.mxu3 %v1619_v13 }
  0x9b   :  { %v253_v62 = vpop.f32.mrf.mxu0 }
  0x9c   :  { %v302_v63 = vpop.f32.mrf.mxu1 }
  0x9d   :  { %v303_v16 = vadd.f32 %v302_v63, %v253_v62 }
  0xa3   :  { %v362_v5 = vpop.f32.mrf.mxu2  ;;  %v255_v7 = vpop.f32.mrf.mxu0 }
  0xa4   :  { %v304_v8 = vpop.f32.mrf.mxu1  ;;  %v1625_v21 = vadd.f32 %v362_v5, %v303_v16  ;;  %v1200_v16 = vld [vmem:[#allocation5 + $0x78] sm:$0xff] }
  0xa5   :  { %v305_v17 = vadd.f32 %v304_v8, %v255_v7  ;;  %681 = vmatpush.bf16.msrb.mxu1 %v1200_v16 }
  0xa6   :  { %v385_v28 = vmul.f32 %v1625_v21, %v1625_v21 }
  0xab   :  { %v364_v12 = vpop.f32.mrf.mxu2  ;;  %v258_v14 = vpop.f32.mrf.mxu0 }
  0xac   :  { %v307_v15 = vpop.f32.mrf.mxu1  ;;  %v1623_v20 = vadd.f32 %v364_v12, %v305_v17  ;;  %v1216_v17 = vld [vmem:[#allocation5 + $0xb8] sm:$0xff] }
  0xad   :  { %v308_v18 = vadd.f32 %v307_v15, %v258_v14  ;;  %v1652_v15 = vld [vmem:[%s1761_s8] sm:$0xff]  ;;  %767 = vmatpush.bf16.msrb.mxu2 %v1216_v17 }
  0xae   :  { %v386_v27 = vmul.f32 %v1623_v20, %v1623_v20  ;;  %v376_v29 = vadd.f32 %v1623_v20, %v1625_v21  ;;  %486 = vmatpush.msrb.mxu3 %v1652_v15 }
  0xb0   :  { %v389_v33 = vadd.f32 %v386_v27, %v385_v28  ;;  %v1207_v27 = vld [vmem:[#allocation5 + $0x30] sm:$0xff] }
  0xb3   :  { %v367_v19 = vpop.f32.mrf.mxu2  ;;  %v260_v24 = vpop.f32.mrf.mxu0 }
  0xb4   :  { %v1627_v22 = vadd.f32 %v367_v19, %v308_v18  ;;  %v309_v25 = vpop.f32.mrf.mxu1  ;;  %v1208_v18 = vld [vmem:[#allocation5 + $0x38] sm:$0xff]  ;;  %v1199_v19 = vld [vmem:[#allocation5 + $0x70] sm:$0xff] }
  0xb5   :  { %v310_v31 = vadd.f32 %v309_v25, %v260_v24  ;;  %v1215_v24 = vld [vmem:[#allocation5 + $0xb0] sm:$0xff]  ;;  %614 = vmatpush.bf16.msrb.mxu0 %v1208_v18  ;;  %682 = vmatpush.bf16.msrb.mxu1 %v1199_v19 }
  0xb6   :  { %v387_v30 = vmul.f32 %v1627_v22, %v1627_v22  ;;  %v377_v34 = vadd.f32 %v376_v29, %v1627_v22  ;;  %768 = vmatpush.bf16.msrb.mxu2 %v1215_v24 }
  0xb8   :  { %v390_v37 = vadd.f32 %v389_v33, %v387_v30  ;;  %v1214_v30 = vld [vmem:[#allocation5 + $0xa8] sm:$0xff]  ;;  %v1213_v33 = vld [vmem:[#allocation5 + $0xa0] sm:$0xff] }
  0xb9   :  { %615 = vmatpush.bf16.msrb.mxu0 %v1207_v27 }
  0xba   :  { %769 = vmatpush.bf16.msrb.mxu2 %v1214_v30 }
  0xbb   :  { %v369_v32 = vpop.f32.mrf.mxu2 }
  0xbc   :  { %v1638_v35 = vadd.f32 %v369_v32, %v310_v31  ;;  %v1206_v31 = vld [vmem:[#allocation5 + $0x28] sm:$0xff] }
  0xbd   :  { %616 = vmatpush.bf16.msrb.mxu0 %v1206_v31 }
  0xbe   :  { %v378_v38 = vadd.f32 %v377_v34, %v1638_v35  ;;  %v388_v39 = vmul.f32 %v1638_v35, %v1638_v35  ;;  %770 = vmatpush.bf16.msrb.mxu2 %v1213_v33 }
  0xc0   :  { %v379_v40 = vrot.slane %v378_v38, 4  ;;  %v391_v41 = vadd.f32 %v390_v37, %v388_v39 }
  0xc2   :  { %v380_v42 = vadd.f32 %v379_v40, %v378_v38  ;;  %v392_v43 = vrot.slane %v391_v41, 4  ;;  %v1204_v38 = vld [vmem:[#allocation5 + $0x18] sm:$0xff] }
  0xc3   :  { %v459_v40 = vld [vmem:[#allocation2] sm:$0x1] }
  0xc4   :  { %v381_v45 = vrot.slane %v380_v42, 2  ;;  %v393_v47 = vadd.f32 %v392_v43, %v391_v41  ;;  %v1194_v43 = vld [vmem:[#allocation5 + $0x48] sm:$0xff] }
  0xc6   :  { %v382_v48 = vadd.f32 %v381_v45, %v380_v42  ;;  %v394_v49 = vrot.slane %v393_v47, 2  ;;  %v1211_v42 = vld [vmem:[#allocation5 + $0x90] sm:$0xff]  ;;  %v1202_v45 = vld [vmem:[#allocation5 + $0x8] sm:$0xff] }
  0xc8   :  { %v383_v50 = vrot.slane %v382_v48, 1  ;;  %v395_v51 = vadd.f32 %v394_v49, %v393_v47  ;;  %v1193_v47 = vld [vmem:[#allocation5 + $0x40] sm:$0xff] }
  0xca   :  { %v396_v52 = vrot.slane %v395_v51, 1  ;;  %v384_v54 = vadd.f32 %v383_v50, %v382_v48  ;;  %v1201_v48 = vld [vmem:[#allocation5] sm:$0xff] }
  0xcc   :  { %v397_v62 = vadd.f32 %v396_v52, %v395_v51 }
  0xce   :  { %v399_v63 = vsel %vm398_vm7, %v384_v54, %v397_v62 }
  0xcf   :  { %432 = vmatmul.f32.vlgmr.msra.gmra.mxu3 %v399_v63 }
  0xd0   :  { %813 = vmatpush.msra.mxu3 %v1530_v55  ;;  %v1198_v55 = vld [vmem:[#allocation5 + $0x68] sm:$0xff] }
  0xd1   :  { %683 = vmatpush.bf16.msrb.mxu1 %v1198_v55 }
  0xd2   :  { %814 = vmatpush.msra.mxu3 %v1536_v56 }
  0xd4   :  { %815 = vmatpush.msra.mxu3 %v1542_v57  ;;  %v1197_v57 = vld [vmem:[#allocation5 + $0x60] sm:$0xff] }
  0xd5   :  { %684 = vmatpush.bf16.msrb.mxu1 %v1197_v57 }
  0xd6   :  { %816 = vmatpush.msra.mxu3 %v1548_v58  ;;  %v1205_v58 = vld [vmem:[#allocation5 + $0x20] sm:$0xff] }
  0xd7   :  { %617 = vmatpush.bf16.msrb.mxu0 %v1205_v58 }
  0xd8   :  { %817 = vmatpush.msra.mxu3 %v1554_v59  ;;  %v1196_v59 = vld [vmem:[#allocation5 + $0x58] sm:$0xff] }
  0xd9   :  { %685 = vmatpush.bf16.msrb.mxu1 %v1196_v59 }
  0xda   :  { %818 = vmatpush.msra.mxu3 %v1560_v60  ;;  %v1212_v60 = vld [vmem:[#allocation5 + $0x98] sm:$0xff] }
  0xdb   :  { %771 = vmatpush.bf16.msrb.mxu2 %v1212_v60  ;;  %618 = vmatpush.bf16.msrb.mxu0 %v1204_v38 }
  0xdc   :  { %819 = vmatpush.msra.mxu3 %v1566_v61  ;;  %v441_v61 = vld [vmem:[%s1755_s2] sm:$0x1] }
  0xde   :  { %820 = vmatpush.msra.mxu3 %v1572_v0 }
  0xdf   :  { %772 = vmatpush.bf16.msrb.mxu2 %v1211_v42 }
  0xe0   :  { %821 = vmatpush.msra.mxu3 %v1578_v2 }
  0xe2   :  { %822 = vmatpush.msra.mxu3 %v1584_v3 }
  0xe4   :  { %823 = vmatpush.msra.mxu3 %v1590_v4 }
  0xe6   :  { %824 = vmatpush.msra.mxu3 %v1595_v6  ;;  %v1195_v6 = vld [vmem:[#allocation5 + $0x50] sm:$0xff] }
  0xe7   :  { %686 = vmatpush.bf16.msrb.mxu1 %v1195_v6 }
  0xe8   :  { %825 = vmatpush.msra.mxu3 %v1601_v9  ;;  %v1203_v9 = vld [vmem:[#allocation5 + $0x10] sm:$0xff] }
  0xe9   :  { %619 = vmatpush.bf16.msrb.mxu0 %v1203_v9 }
  0xea   :  { %826 = vmatpush.msra.mxu3 %v1607_v10  ;;  %v1210_v10 = vld [vmem:[#allocation5 + $0x88] sm:$0xff] }
  0xeb   :  { %687 = vmatpush.bf16.msrb.mxu1 %v1194_v43  ;;  %773 = vmatpush.bf16.msrb.mxu2 %v1210_v10 }
  0xec   :  { %827 = vmatpush.msra.mxu3 %v1613_v11  ;;  %v1209_v11 = vld [vmem:[#allocation5 + $0x80] sm:$0xff] }
  0xed   :  { %620 = vmatpush.bf16.msrb.mxu0 %v1202_v45 }
  0xee   :  { %828 = vmatpush.msra.mxu3 %v1619_v13 }
  0xef   :  { %688 = vmatpush.bf16.msrb.mxu1 %v1193_v47  ;;  %774 = vmatpush.bf16.msrb.mxu2 %v1209_v11 }
  0xf1   :  { %621 = vmatpush.bf16.msrb.mxu0 %v1201_v48 }
  0xf5   :  { %881 = vmatpush.msra.mxu0 %v1652_v15 }
 0x152   :  { %v1644_v5 = vpop.f32.mrf.mxu3 }
 0x153   :  { %v436_v7 = vmul.f32 %v1644_v5, %v1644_v5 }
 0x155   :  { %v438_v8 = vrot.slane %v436_v7, 7 }
 0x157   :  { %v440_v12 = vsub.f32 %v1644_v5, %v438_v8 }
 0x159   :  { %v442_v14 = vadd.f32 1e-05, %v440_v12 }
 0x15b   :  { %1235 = vrsqrt.f32 %v442_v14  ;;  %vm449_vm9 = vweird.f32 %v442_v14 }
 0x161   :  { %v1236_v25 = vpop.eup %1235 }
 0x162   :  { %v444_v28 = vmul.f32 %v1236_v25, %v442_v14  ;;  %vm450_vm8 = vweird.f32 %v1236_v25 }
 0x163   :  { %vm451_vm10 = vmor %vm449_vm9, %vm450_vm8 }
 0x164   :  { %v445_v29 = vmul.f32 %v1236_v25, %v444_v28 }
 0x166   :  { %v446_v56 = vmul.f32 0.5, %v445_v29 }
 0x168   :  { %v447_v32 = vsub.f32 1.5, %v446_v56 }
 0x16a   :  { %v448_v34 = vmul.f32 %v1236_v25, %v447_v32 }
 0x16c   :  { %v452_v37 = vsel %vm451_vm10, %v1236_v25, %v448_v34 }
 0x16d   :  { %454 = vst [vmem:[#allocation1] sm:$0xff] %v452_v37 }
 0x174   :  { %v456_v0 = vld [vmem:[#allocation1 + $0x1] ss:$9 sm:$0xff] }
 0x175   :  { %v458_v39 = vmul.f32 %v456_v0, %v441_v61 }
 0x177   :  { %v460_v2 = vmul.f32 %v458_v39, %v1644_v5 }
 0x179   :  { %v461_v3 = vsub.f32 %v459_v40, %v460_v2 }
 0x17b   :  { %v463_v41 = vperm.slane %v461_v3, 0 }
 0x17d   :  { %v465_v4 = vsel %vm398_vm7, %v458_v39, %v463_v41 }
 0x17e   :  { %1053 = vmatmul.msk.f32.vlgmr.msrb.gmra.mxu3 %vm467_vm11, %v465_v4 }
 0x201   :  { %v488_v13 = vpop.f32.mrf.mxu3 }
 0x202   :  { %v491_v49 = vperm.slane %v488_v13, 0  ;;  %v496_v50 = vperm.slane %v488_v13, 1 }
 0x204   :  { %v492_v51 = vmul.f32 %v491_v49, %v1625_v21  ;;  %v493_v52 = vmul.f32 %v491_v49, %v1623_v20  ;;  %v494_v54 = vmul.f32 %v491_v49, %v1627_v22  ;;  %v495_v62 = vmul.f32 %v491_v49, %v1638_v35 }
 0x206   :  { %v499_v63 = vadd.f32 %v496_v50, %v494_v54  ;;  %v500_v5 = vadd.f32 %v496_v50, %v495_v62  ;;  %v497_v7 = vadd.f32 %v496_v50, %v492_v51  ;;  %v498_v8 = vadd.f32 %v496_v50, %v493_v52 }
 0x208   :  { %v503_v12 = vmax.f32 %v499_v63, 0.0  ;;  %v504_v14 = vmax.f32 %v500_v5, 0.0  ;;  %v501_v16 = vmax.f32 %v497_v7, 0.0  ;;  %v502_v17 = vmax.f32 %v498_v8, 0.0 }
 0x20a   :  { %v505_v15 = vpack.c.bf16 %v502_v17, %v501_v16  ;;  %v507_v18 = vrot.slane %v501_v16, 7  ;;  %v508_v19 = vrot.slane %v502_v17, 7  ;;  %v510_v24 = vrot.slane %v504_v14, 7 }
 0x20b   :  { %v519_v25 = vrot.slane %v501_v16, 1  ;;  %v520_v21 = vrot.slane %v502_v17, 1  ;;  %v521_v27 = vrot.slane %v503_v12, 1  ;;  %v509_v30 = vrot.slane %v503_v12, 7 }
 0x20c   :  { %689 = vmatmul.bf16.vlgmr.msrb.gmra.mxu1 %v505_v15  ;;  %v513_v20 = vsel %vm156_vm0, %v507_v18, %v508_v19  ;;  %v514_v22 = vsel %vm156_vm0, %v510_v24, %v507_v18  ;;  %v522_v31 = vrot.slane %v504_v14, 1  ;;  %v506_v56 = vpack.c.bf16 %v504_v14, %v503_v12 }
 0x20d   :  { %v1087_v35 = vpack.c.bf16 %v513_v20, %v514_v22  ;;  %v524_v28 = vsel %vm177_vm1, %v520_v21, %v521_v27  ;;  %v525_v29 = vsel %vm177_vm1, %v519_v25, %v520_v21  ;;  %v511_v23 = vsel %vm156_vm0, %v509_v30, %v510_v24  ;;  %v1220_v24 = vld [vmem:[#allocation7 + $0x18] sm:$0xff]  ;;  %v1218_v21 = vld [vmem:[#allocation7 + $0x8] sm:$0xff] }
 0x20e   :  { %v1157_v55 = vpack.c.bf16 %v524_v28, %v525_v29  ;;  %v512_v32 = vsel %vm156_vm0, %v508_v19, %v509_v30  ;;  %v523_v57 = vsel %vm177_vm1, %v521_v27, %v522_v31  ;;  %v526_v33 = vsel %vm177_vm1, %v522_v31, %v519_v25  ;;  %1221 = vmatpush.bf16.msra.mxu2 %v1220_v24  ;;  %v1219_v25 = vld [vmem:[#allocation7 + $0x10] sm:$0xff]  ;;  %v1217_v27 = vld [vmem:[#allocation7] sm:$0xff] }
 0x20f   :  { %1088 = vmatmul.msk.bf16.vlgmr.msrb.gmra.mxu0 %vm1086_vm13, %v1087_v35  ;;  %v1090_v26 = vpack.c.bf16 %v511_v23, %v512_v32  ;;  %v1160_v58 = vpack.c.bf16 %v526_v33, %v523_v57  ;;  %936 = vmatpush.bf16.msra.mxu1 %v1220_v24 }
 0x210   :  { %1158 = vmatmul.msk.bf16.vlgmr.msrb.gmra.mxu2 %vm1156_vm14, %v1157_v55 }
 0x212   :  { %1222 = vmatpush.bf16.msra.mxu2 %v1219_v25 }
 0x213   :  { %937 = vmatpush.bf16.msra.mxu1 %v1219_v25 }
 0x216   :  { %1223 = vmatpush.bf16.msra.mxu2 %v1218_v21 }
 0x217   :  { %938 = vmatpush.bf16.msra.mxu1 %v1218_v21 }
 0x21a   :  { %1224 = vmatpush.bf16.msra.mxu2 %v1217_v27 }
 0x21b   :  { %939 = vmatpush.bf16.msra.mxu1 %v1217_v27 }
 0x21c   :  { %694 = vmatmul.bf16.gmra.mxu1 %v506_v56 }
 0x21f   :  { %1091 = vmatmul.msk.bf16.gmra.mxu0 %vm1089_vm15, %v1090_v26  ;;  %v856_v26 = vld [vmem:[%s1759_s6] sm:$0x1] }
 0x220   :  { %1161 = vmatmul.msk.bf16.gmra.mxu2 %vm1159_vm2, %v1160_v58 }
 0x22c   :  { %1179 = vmatmul.msk.bf16.vlgmr.msra.gmra.mxu1 %vm237_vm4, %v1493_v36  ;;  %v838_v36 = vld [vmem:[%s1758_s5] sm:$0x1]  ;;  %s1347_s5 = smov [#allocation8]  }
 0x22d   :  { %s967_s6 = sshll.u32 %s1347_s5, 4  ;;  %s968_s6 = int_to_ptr.vmem [resolvable:$true] %s967_s6 }
 0x230   :  { %1180 = vmatmul.msk.bf16.vlgmr.msra.gmra.mxu2 %vm237_vm4, %v1521_v53 }
 0x289   :  { %v690_v34 = vpop.f32.mrf.mxu1 }
 0x28c   :  { %v623_v37 = vpop.f32.mrf.mxu0 }
 0x28d   :  { %v691_v40 = vadd.f32 %v690_v34, %v623_v37 }
 0x291   :  { %v692_v38 = vpop.f32.mrf.mxu1 }
 0x293   :  { %v776_v59 = vpop.f32.mrf.mxu2 }
 0x294   :  { %v625_v60 = vpop.f32.mrf.mxu0  ;;  %v1712_v41 = vadd.f32 %v776_v59, %v691_v40 }
 0x295   :  { %v693_v39 = vadd.f32 %v692_v38, %v625_v60 }
 0x296   :  { %v799_v9 = vmul.f32 %v1712_v41, %v1712_v41 }
 0x299   :  { %v695_v0 = vpop.f32.mrf.mxu1 }
 0x29b   :  { %v778_v1 = vpop.f32.mrf.mxu2 }
 0x29c   :  { %v628_v61 = vpop.f32.mrf.mxu0  ;;  %v1710_v2 = vadd.f32 %v778_v1, %v693_v39  ;;  %v1234_v1 = vld [vmem:[%s1763_s10] ss:$0 sm:$0xff] }
 0x29d   :  { %v696_v3 = vadd.f32 %v695_v0, %v628_v61 }
 0x29e   :  { %v800_v6 = vmul.f32 %v1710_v2, %v1710_v2  ;;  %v790_v43 = vadd.f32 %v1710_v2, %v1712_v41 }
 0x2a0   :  { %v803_v11 = vadd.f32 %v800_v6, %v799_v9 }
 0x2a1   :  { %v697_v42 = vpop.f32.mrf.mxu1 }
 0x2a3   :  { %v781_v44 = vpop.f32.mrf.mxu2 }
 0x2a4   :  { %v1714_v46 = vadd.f32 %v781_v44, %v696_v3  ;;  %v630_v4 = vpop.f32.mrf.mxu0 }
 0x2a5   :  { %v698_v45 = vadd.f32 %v697_v42, %v630_v4 }
 0x2a6   :  { %v801_v10 = vmul.f32 %v1714_v46, %v1714_v46  ;;  %v791_v48 = vadd.f32 %v790_v43, %v1714_v46 }
 0x2a8   :  { %v804_v49 = vadd.f32 %v803_v11, %v801_v10 }
 0x2a9   :  { %v941_v60 = vpop.f32.mrf.mxu1 }
 0x2aa   :  { %v942_v9 = vadd.f32 %v1234_v1, %v941_v60 }
 0x2ab   :  { %v783_v47 = vpop.f32.mrf.mxu2 }
 0x2ac   :  { %v1725_v13 = vadd.f32 %v783_v47, %v698_v45 }
 0x2ae   :  { %v792_v50 = vadd.f32 %v791_v48, %v1725_v13  ;;  %v802_v51 = vmul.f32 %v1725_v13, %v1725_v13 }
 0x2b0   :  { %v793_v52 = vrot.slane %v792_v50, 4  ;;  %v805_v54 = vadd.f32 %v804_v49, %v802_v51 }
 0x2b1   :  { %v943_v0 = vpop.f32.mrf.mxu1 }
 0x2b2   :  { %v794_v62 = vadd.f32 %v793_v52, %v792_v50  ;;  %v806_v63 = vrot.slane %v805_v54, 4  ;;  %v944_v10 = vadd.f32 %v1234_v1, %v943_v0 }
 0x2b3   :  { %v946_v38 = vpop.f32.mrf.mxu2 }
 0x2b4   :  { %v795_v5 = vrot.slane %v794_v62, 2  ;;  %v807_v7 = vadd.f32 %v806_v63, %v805_v54  ;;  %v947_v43 = vadd.f32 %v1234_v1, %v946_v38 }
 0x2b6   :  { %v796_v8 = vadd.f32 %v795_v5, %v794_v62  ;;  %v808_v12 = vrot.slane %v807_v7, 2 }
 0x2b8   :  { %v797_v14 = vrot.slane %v796_v8, 1  ;;  %v809_v16 = vadd.f32 %v808_v12, %v807_v7 }
 0x2ba   :  { %v810_v17 = vrot.slane %v809_v16, 1  ;;  %v798_v15 = vadd.f32 %v797_v14, %v796_v8 }
 0x2bb   :  { %v948_v39 = vpop.f32.mrf.mxu2 }
 0x2bc   :  { %v811_v18 = vadd.f32 %v810_v17, %v809_v16  ;;  %v949_v45 = vadd.f32 %v1234_v1, %v948_v39 }
 0x2be   :  { %v812_v19 = vsel %vm398_vm7, %v798_v15, %v811_v18 }
 0x2bf   :  { %829 = vmatmul.f32.vlgmr.msra.gmra.mxu3 %v812_v19 }
 0x342   :  { %v830_v20 = vpop.f32.mrf.mxu3 }
 0x343   :  { %v833_v22 = vmul.f32 %v830_v20, %v830_v20 }
 0x345   :  { %v835_v35 = vrot.slane %v833_v22, 7 }
 0x347   :  { %v837_v28 = vsub.f32 %v830_v20, %v835_v35 }
 0x349   :  { %v839_v29 = vadd.f32 1e-05, %v837_v28 }
 0x34b   :  { %1237 = vrsqrt.f32 %v839_v29  ;;  %vm846_vm1 = vweird.f32 %v839_v29 }
 0x351   :  { %v1238_v55 = vpop.eup %1237 }
 0x352   :  { %v841_v30 = vmul.f32 %v1238_v55, %v839_v29  ;;  %vm847_vm0 = vweird.f32 %v1238_v55 }
 0x353   :  { %vm848_vm3 = vmor %vm846_vm1, %vm847_vm0 }
 0x354   :  { %v842_v31 = vmul.f32 %v1238_v55, %v841_v30 }
 0x356   :  { %v843_v56 = vmul.f32 0.5, %v842_v31 }
 0x358   :  { %v844_v23 = vsub.f32 1.5, %v843_v56 }
 0x35a   :  { %v845_v32 = vmul.f32 %v1238_v55, %v844_v23 }
 0x35c   :  { %v849_v57 = vsel %vm848_vm3, %v1238_v55, %v845_v32 }
 0x35d   :  { %851 = vst [vmem:[#allocation1] sm:$0xff] %v849_v57 }
 0x364   :  { %v853_v53 = vld [vmem:[#allocation1 + $0x1] ss:$9 sm:$0xff] }
 0x365   :  { %v855_v33 = vmul.f32 %v853_v53, %v838_v36 }
 0x367   :  { %v857_v58 = vmul.f32 %v855_v33, %v830_v20 }
 0x369   :  { %v858_v34 = vsub.f32 %v856_v26, %v857_v58 }
 0x36b   :  { %v860_v37 = vperm.slane %v858_v34, 0 }
 0x36d   :  { %v862_v59 = vsel %vm398_vm7, %v855_v33, %v860_v37 }
 0x36e   :  { %1162 = vmatmul.msk.f32.vlgmr.msra.gmra.mxu0 %vm467_vm11, %v862_v59 }
 0x3eb   :  { %v883_v61 = vpop.f32.mrf.mxu0 }
 0x3ec   :  { %v886_v44 = vperm.slane %v883_v61, 0  ;;  %v891_v40 = vperm.slane %v883_v61, 1 }
 0x3ee   :  { %v887_v3 = vmul.f32 %v886_v44, %v1712_v41  ;;  %v888_v4 = vmul.f32 %v886_v44, %v1710_v2  ;;  %v889_v6 = vmul.f32 %v886_v44, %v1714_v46  ;;  %v890_v42 = vmul.f32 %v886_v44, %v1725_v13 }
 0x3f0   :  { %v892_v47 = vadd.f32 %v891_v40, %v887_v3  ;;  %v893_v11 = vadd.f32 %v891_v40, %v888_v4  ;;  %v894_v48 = vadd.f32 %v891_v40, %v889_v6  ;;  %v895_v49 = vadd.f32 %v891_v40, %v890_v42 }
 0x3f2   :  { %v951_v50 = vadd.f32 %v942_v9, %v892_v47  ;;  %v952_v51 = vadd.f32 %v944_v10, %v893_v11  ;;  %v953_v52 = vadd.f32 %v947_v43, %v894_v48  ;;  %v954_v54 = vadd.f32 %v949_v45, %v895_v49 }
 0x3f4   :  { %v955_v2 = vmax.f32 %v951_v50, 0.0  ;;  %v956_v41 = vmax.f32 %v952_v51, 0.0  ;;  %v957_v46 = vmax.f32 %v953_v52, 0.0  ;;  %v958_v13 = vmax.f32 %v954_v54, 0.0 }
 0x3f6   :  { %959 = vst [vmem:[#allocation8] sm:$0xff] %v955_v2 }
 0x3f7   :  { %960 = vst [vmem:[#allocation8 + $0x8] sm:$0xff] %v956_v41 }
 0x3f8   :  { %961 = vst [vmem:[#allocation8 + $0x10] sm:$0xff] %v957_v46 }
 0x3f9   :  { %962 = vst [vmem:[#allocation8 + $0x18] sm:$0xff] %v958_v13 }
 0x3fa   :  { %975 = dma.vmem_to_hbm [thread:$0]  %s968_s6, 512, %s970_s15, [#allocation4], %s1348_s9, %s1348_s9, %s1349_s0  }
 0x3fb   :  { %1339 = dma.done.wait [#allocation4], 512  }
 0x3fc   :  { %1340 = vsyncadd [#allocation4], 4294966784 }
 0x3fd   :  { %980 = vsyncpa [#allocation3], 1 }
 0x3fe   :  { %981 = vsyncpa [#allocation6], 1 }
 0x3ff   :  { %982 = vsyncpa [#allocation4], 1 }

</bundles_post_ra>
